<compile_context>
chip_gen: v7x
topology: tpu7x:2x2x1
jax: 0.10.0
libtpu: 0.0.40
codegen_flags: <defaults>
</compile_context>

<pallas_src>
import jax
import jax.numpy as jnp
from jax.experimental import pallas as pl
from jax.experimental.pallas import tpu as pltpu


def _leaky_relu(x, negative_slope=0.2):
    # For slope in (0,1): max(x, slope*x) == where(x>0, x, slope*x).
    return jnp.maximum(x, negative_slope * x)


def _round_up(x, m):
    return ((x + m - 1) // m) * m


def _make_generator_kernel(in_dim):
    def kernel(z_ref,
               w1t_ref, b1_ref,
               w2t_ref, b2_ref,
               w3t_ref, b3_ref,
               w4_ref, b4_ref,
               out_ref):
        # z_ref: (in_dim, TB)  activations: (H, TB)  out_ref: (1, TB)
        z = z_ref[...]                                       # f32

        # ---- Layer 1: K == 1 -> VPU broadcast outer product (skip the MXU).
        if in_dim == 1:
            h = w1t_ref[...] * z + b1_ref[...]               # (H,1)*(1,TB)->(H,TB)
        else:
            h = jnp.dot(w1t_ref[...], z,
                        preferred_element_type=jnp.float32) + b1_ref[...]
        h = _leaky_relu(h)

        # ---- Layers 2/3: real 128x128 matmuls, bf16 operands + f32 acc.
        h = jnp.dot(w2t_ref[...], h.astype(jnp.bfloat16),
                    preferred_element_type=jnp.float32) + b2_ref[...]
        h = _leaky_relu(h)

        h = jnp.dot(w3t_ref[...], h.astype(jnp.bfloat16),
                    preferred_element_type=jnp.float32) + b3_ref[...]
        h = _leaky_relu(h)

        # ---- Layer 4: single output feature.  VPU multiply + sublane (axis-0)
        # reduction -> lane-dense (1, TB) row, unmasked-ish stores.
        out = jnp.sum(h * w4_ref[...], axis=0, keepdims=True) + b4_ref[...]
        out_ref[...] = out.astype(out_ref.dtype)

    return kernel


def generator_forward(z, params, *, tile_b=2048):
    """z: (B, input_dim) float32; params: dict of f32 weights/biases.

    Weights are (in_features, out_features); forward == x @ W + b, matching
    PyTorch's x @ W_torch.T + b.
    """
    B, in_dim = z.shape
    H = params["w1"].shape[1]

    # ---- Tile-size selection: big tiles amortize pipeline overhead; cap so
    # the grid keeps >= 2 steps when the batch allows it (megacore).
    tb = min(int(tile_b), max(128, _round_up(pl.cdiv(B, 2), 128)))
    B_pad = _round_up(B, tb)
    grid = B_pad // tb

    # Feature-major input: (in_dim, B_pad).  For in_dim == 1 this is a reshape.
    zT = z.T
    if B_pad != B:
        zT = jnp.pad(zT, ((0, 0), (0, B_pad - B)))

    # Transposed weights so the kernel computes h' = W^T @ h (one-time, on host
    # side of the call).  bf16 for the two 128x128 layers halves their DMA too.
    w1t = params["w1"].T.astype(jnp.float32)                 # (H, in_dim)
    b1c = params["b1"].reshape(H, 1).astype(jnp.float32)
    w2t = params["w2"].T.astype(jnp.bfloat16)                # (H, H)
    b2c = params["b2"].reshape(H, 1).astype(jnp.float32)
    w3t = params["w3"].T.astype(jnp.bfloat16)                # (H, H)
    b3c = params["b3"].reshape(H, 1).astype(jnp.float32)
    w4c = params["w4"].reshape(H, 1).astype(jnp.float32)     # (H, 1)
    b4s = params["b4"].reshape(1, 1).astype(jnp.float32)

    cparams = dict(dimension_semantics=("parallel",))
    if tb >= 4096:
        # v5e's default scoped VMEM is 16 MiB; large f32 (H, TB) activations
        # plus double-buffered I/O blocks need more head-room.
        cparams["vmem_limit_bytes"] = 64 << 20

    full = lambda shape: pl.BlockSpec(shape, lambda i: (0, 0))

    out_row = pl.pallas_call(
        _make_generator_kernel(in_dim),
        out_shape=jax.ShapeDtypeStruct((1, B_pad), jnp.float32),
        grid_spec=pltpu.PrefetchScalarGridSpec(
            num_scalar_prefetch=0,
            grid=(grid,),
            in_specs=[
                pl.BlockSpec((in_dim, tb), lambda i: (0, i)),  # z tile (lane-dense)
                full((H, in_dim)), full((H, 1)),               # layer 1 (f32)
                full((H, H)),      full((H, 1)),               # layer 2 (bf16 W)
                full((H, H)),      full((H, 1)),               # layer 3 (bf16 W)
                full((H, 1)),      full((1, 1)),               # layer 4 (f32)
            ],
            out_specs=pl.BlockSpec((1, tb), lambda i: (0, i)),
        ),
        compiler_params=pltpu.CompilerParams(**cparams),
    )(zT,
      w1t, b1c,
      w2t, b2c,
      w3t, b3c,
      w4c, b4s)

    return out_row[0, :B].reshape(B, 1)


def init_params(key, input_dim=1, hidden_dim=128):
    """Deterministic synthetic initialization (PyTorch-like uniform fan-in)."""
    ks = jax.random.split(key, 8)

    def linear(kw, kb, fan_in, fan_out):
        bound = 1.0 / jnp.sqrt(jnp.float32(fan_in))
        w = jax.random.uniform(kw, (fan_in, fan_out), jnp.float32, -bound, bound)
        b = jax.random.uniform(kb, (1, fan_out), jnp.float32, -bound, bound)
        return w, b

    w1, b1 = linear(ks[0], ks[1], input_dim, hidden_dim)
    w2, b2 = linear(ks[2], ks[3], hidden_dim, hidden_dim)
    w3, b3 = linear(ks[4], ks[5], hidden_dim, hidden_dim)
    w4, b4 = linear(ks[6], ks[7], hidden_dim, 1)
    return dict(w1=w1, b1=b1, w2=w2, b2=b2, w3=w3, b3=b3, w4=w4, b4=b4)


def generator_reference(z, p, bf16_hidden=False):
    """Pure-JAX reference.  bf16_hidden=True mirrors the kernel's precision
    (bf16 operands, f32 accumulation for the two 128x128 layers)."""
    hp = jax.lax.Precision.HIGHEST
    dt = jnp.bfloat16 if bf16_hidden else jnp.float32
    h = _leaky_relu(jnp.dot(z, p["w1"], precision=hp) + p["b1"])
    h = _leaky_relu(jnp.dot(h.astype(dt), p["w2"].astype(dt), precision=hp,
                            preferred_element_type=jnp.float32) + p["b2"])
    h = _leaky_relu(jnp.dot(h.astype(dt), p["w3"].astype(dt), precision=hp,
                            preferred_element_type=jnp.float32) + p["b3"])
    return jnp.dot(h, p["w4"], precision=hp) + p["b4"]


if __name__ == "__main__":
    key = jax.random.PRNGKey(0)
    k_param, k_z = jax.random.split(key)

    input_dim, hidden_dim = 1, 128
    batch = 256  # small demo; wrapper caps tile_b -> 128-row tiles, grid of 2

    params = init_params(k_param, input_dim, hidden_dim)
    z = jax.random.normal(k_z, (batch, input_dim), jnp.float32)

    out = jax.block_until_ready(generator_forward(z, params))
    assert out.shape == (batch, 1)

    ref_bf16 = generator_reference(z, params, bf16_hidden=True)
    ref_f32 = generator_reference(z, params, bf16_hidden=False)
    assert jnp.allclose(out, ref_bf16, atol=1e-3, rtol=1e-3), \
        "mismatch vs precision-matched reference"
    # bf16 matmul operands (f32 accumulation) => looser tolerance vs pure f32.
    assert jnp.allclose(out, ref_f32, atol=5e-2, rtol=5e-2), \
        "mismatch vs f32 reference"

    # Ragged batch (not a multiple of the tile): exercises the padding path.
    z2 = jax.random.normal(jax.random.PRNGKey(3), (200, input_dim), jnp.float32)
    out2 = jax.block_until_ready(generator_forward(z2, params))
    assert out2.shape == (200, 1)
    assert jnp.allclose(out2, generator_reference(z2, params, bf16_hidden=True),
                        atol=1e-3, rtol=1e-3), "mismatch on ragged batch"

    print("KERNEL_OK")
</pallas_src>

<mosaic_0001>
module attributes {stable_mosaic.version = 11 : i64} {
  func.func @kernel(%arg0: i32, %arg1: memref<1x128xf32, #tpu.memory_space<vmem>>, %arg2: memref<128x1xf32, #tpu.memory_space<vmem>>, %arg3: memref<128x1xf32, #tpu.memory_space<vmem>>, %arg4: memref<128x128xbf16, #tpu.memory_space<vmem>>, %arg5: memref<128x1xf32, #tpu.memory_space<vmem>>, %arg6: memref<128x128xbf16, #tpu.memory_space<vmem>>, %arg7: memref<128x1xf32, #tpu.memory_space<vmem>>, %arg8: memref<128x1xf32, #tpu.memory_space<vmem>>, %arg9: memref<1x1xf32, #tpu.memory_space<vmem>>, %arg10: memref<1x128xf32, #tpu.memory_space<vmem>>) attributes {dimension_semantics = [#tpu.dimension_semantics<parallel>], iteration_bounds = array<i64: 2>, scalar_prefetch = 0 : i64, scratch_operands = 0 : i64, tpu.core_type = #tpu.core_type<tc>, window_params = [{transform_indices = @transform_0, window_bounds = array<i64: 1, 128>}, {pipeline_mode = #tpu.pipeline_mode<synchronous>, transform_indices = @transform_1, window_bounds = array<i64: 128, 1>}, {pipeline_mode = #tpu.pipeline_mode<synchronous>, transform_indices = @transform_2, window_bounds = array<i64: 128, 1>}, {pipeline_mode = #tpu.pipeline_mode<synchronous>, transform_indices = @transform_3, window_bounds = array<i64: 128, 128>}, {pipeline_mode = #tpu.pipeline_mode<synchronous>, transform_indices = @transform_4, window_bounds = array<i64: 128, 1>}, {pipeline_mode = #tpu.pipeline_mode<synchronous>, transform_indices = @transform_5, window_bounds = array<i64: 128, 128>}, {pipeline_mode = #tpu.pipeline_mode<synchronous>, transform_indices = @transform_6, window_bounds = array<i64: 128, 1>}, {pipeline_mode = #tpu.pipeline_mode<synchronous>, transform_indices = @transform_7, window_bounds = array<i64: 128, 1>}, {pipeline_mode = #tpu.pipeline_mode<synchronous>, transform_indices = @transform_8, window_bounds = array<i64: 1, 1>}, {transform_indices = @transform_9, window_bounds = array<i64: 1, 128>}]} {
    %c0 = arith.constant 0 : index
    %c0_0 = arith.constant 0 : index
    %0 = vector.load %arg1[%c0, %c0_0] : memref<1x128xf32, #tpu.memory_space<vmem>>, vector<1x128xf32>
    %c0_1 = arith.constant 0 : index
    %c0_2 = arith.constant 0 : index
    %1 = vector.load %arg2[%c0_1, %c0_2] : memref<128x1xf32, #tpu.memory_space<vmem>>, vector<128x1xf32>
    %2 = vector.broadcast %1 : vector<128x1xf32> to vector<128x128xf32>
    %3 = vector.broadcast %0 : vector<1x128xf32> to vector<128x128xf32>
    %4 = arith.mulf %2, %3 : vector<128x128xf32>
    %c0_3 = arith.constant 0 : index
    %c0_4 = arith.constant 0 : index
    %5 = vector.load %arg3[%c0_3, %c0_4] : memref<128x1xf32, #tpu.memory_space<vmem>>, vector<128x1xf32>
    %6 = vector.broadcast %5 : vector<128x1xf32> to vector<128x128xf32>
    %7 = arith.addf %4, %6 : vector<128x128xf32>
    %cst = arith.constant 2.000000e-01 : f32
    %8 = vector.broadcast %cst : f32 to vector<128x128xf32>
    %9 = arith.mulf %8, %7 : vector<128x128xf32>
    %10 = arith.maximumf %7, %9 : vector<128x128xf32>
    %c0_5 = arith.constant 0 : index
    %c0_6 = arith.constant 0 : index
    %11 = vector.load %arg4[%c0_5, %c0_6] : memref<128x128xbf16, #tpu.memory_space<vmem>>, vector<128x128xbf16>
    %12 = arith.truncf %10 : vector<128x128xf32> to vector<128x128xbf16>
    %cst_7 = arith.constant dense<0.000000e+00> : vector<128x128xf32>
    %13 = tpu.matmul %11, %12, %cst_7 {dimension_numbers = #tpu.dot_dimension_numbers<[1], [0], [0], [1], [0, 0, 1, 1], [], []>} : vector<128x128xbf16>, vector<128x128xbf16>, vector<128x128xf32> -> vector<128x128xf32>
    %c0_8 = arith.constant 0 : index
    %c0_9 = arith.constant 0 : index
    %14 = vector.load %arg5[%c0_8, %c0_9] : memref<128x1xf32, #tpu.memory_space<vmem>>, vector<128x1xf32>
    %15 = vector.broadcast %14 : vector<128x1xf32> to vector<128x128xf32>
    %16 = arith.addf %13, %15 : vector<128x128xf32>
    %cst_10 = arith.constant 2.000000e-01 : f32
    %17 = vector.broadcast %cst_10 : f32 to vector<128x128xf32>
    %18 = arith.mulf %17, %16 : vector<128x128xf32>
    %19 = arith.maximumf %16, %18 : vector<128x128xf32>
    %c0_11 = arith.constant 0 : index
    %c0_12 = arith.constant 0 : index
    %20 = vector.load %arg6[%c0_11, %c0_12] : memref<128x128xbf16, #tpu.memory_space<vmem>>, vector<128x128xbf16>
    %21 = arith.truncf %19 : vector<128x128xf32> to vector<128x128xbf16>
    %cst_13 = arith.constant dense<0.000000e+00> : vector<128x128xf32>
    %22 = tpu.matmul %20, %21, %cst_13 {dimension_numbers = #tpu.dot_dimension_numbers<[1], [0], [0], [1], [0, 0, 1, 1], [], []>} : vector<128x128xbf16>, vector<128x128xbf16>, vector<128x128xf32> -> vector<128x128xf32>
    %c0_14 = arith.constant 0 : index
    %c0_15 = arith.constant 0 : index
    %23 = vector.load %arg7[%c0_14, %c0_15] : memref<128x1xf32, #tpu.memory_space<vmem>>, vector<128x1xf32>
    %24 = vector.broadcast %23 : vector<128x1xf32> to vector<128x128xf32>
    %25 = arith.addf %22, %24 : vector<128x128xf32>
    %cst_16 = arith.constant 2.000000e-01 : f32
    %26 = vector.broadcast %cst_16 : f32 to vector<128x128xf32>
    %27 = arith.mulf %26, %25 : vector<128x128xf32>
    %28 = arith.maximumf %25, %27 : vector<128x128xf32>
    %c0_17 = arith.constant 0 : index
    %c0_18 = arith.constant 0 : index
    %29 = vector.load %arg8[%c0_17, %c0_18] : memref<128x1xf32, #tpu.memory_space<vmem>>, vector<128x1xf32>
    %30 = vector.broadcast %29 : vector<128x1xf32> to vector<128x128xf32>
    %31 = arith.mulf %28, %30 : vector<128x128xf32>
    %cst_19 = arith.constant dense<0.000000e+00> : vector<128xf32>
    %32 = vector.multi_reduction <add>, %31, %cst_19 [0] : vector<128x128xf32> to vector<128xf32>
    %33 = vector.shape_cast %32 : vector<128xf32> to vector<1x128xf32>
    %c0_20 = arith.constant 0 : index
    %c0_21 = arith.constant 0 : index
    %34 = vector.load %arg9[%c0_20, %c0_21] : memref<1x1xf32, #tpu.memory_space<vmem>>, vector<1x1xf32>
    %35 = vector.broadcast %34 : vector<1x1xf32> to vector<1x128xf32>
    %36 = arith.addf %33, %35 : vector<1x128xf32>
    %c0_22 = arith.constant 0 : index
    %c0_23 = arith.constant 0 : index
    %37 = vector.load %arg10[%c0_22, %c0_23] : memref<1x128xf32, #tpu.memory_space<vmem>>, vector<1x128xf32>
    tpu.vector_store %arg10[%c0_22, %c0_23], %36 {strides = array<i32>} : memref<1x128xf32, #tpu.memory_space<vmem>>, vector<1x128xf32>,
    return
  }
  func.func @transform_0(%arg0: i32) -> (i32, i32) {
    %c0_i32 = arith.constant 0 : i32
    %c0_i32_0 = arith.constant 0 : i32
    return %c0_i32, %arg0 : i32, i32
  }
  func.func @transform_1(%arg0: i32) -> (i32, i32) {
    %c0_i32 = arith.constant 0 : i32
    %c0_i32_0 = arith.constant 0 : i32
    %c0_i32_1 = arith.constant 0 : i32
    return %c0_i32, %c0_i32_0 : i32, i32
  }
  func.func @transform_2(%arg0: i32) -> (i32, i32) {
    %c0_i32 = arith.constant 0 : i32
    %c0_i32_0 = arith.constant 0 : i32
    %c0_i32_1 = arith.constant 0 : i32
    return %c0_i32, %c0_i32_0 : i32, i32
  }
  func.func @transform_3(%arg0: i32) -> (i32, i32) {
    %c0_i32 = arith.constant 0 : i32
    %c0_i32_0 = arith.constant 0 : i32
    %c0_i32_1 = arith.constant 0 : i32
    return %c0_i32, %c0_i32_0 : i32, i32
  }
  func.func @transform_4(%arg0: i32) -> (i32, i32) {
    %c0_i32 = arith.constant 0 : i32
    %c0_i32_0 = arith.constant 0 : i32
    %c0_i32_1 = arith.constant 0 : i32
    return %c0_i32, %c0_i32_0 : i32, i32
  }
  func.func @transform_5(%arg0: i32) -> (i32, i32) {
    %c0_i32 = arith.constant 0 : i32
    %c0_i32_0 = arith.constant 0 : i32
    %c0_i32_1 = arith.constant 0 : i32
    return %c0_i32, %c0_i32_0 : i32, i32
  }
  func.func @transform_6(%arg0: i32) -> (i32, i32) {
    %c0_i32 = arith.constant 0 : i32
    %c0_i32_0 = arith.constant 0 : i32
    %c0_i32_1 = arith.constant 0 : i32
    return %c0_i32, %c0_i32_0 : i32, i32
  }
  func.func @transform_7(%arg0: i32) -> (i32, i32) {
    %c0_i32 = arith.constant 0 : i32
    %c0_i32_0 = arith.constant 0 : i32
    %c0_i32_1 = arith.constant 0 : i32
    return %c0_i32, %c0_i32_0 : i32, i32
  }
  func.func @transform_8(%arg0: i32) -> (i32, i32) {
    %c0_i32 = arith.constant 0 : i32
    %c0_i32_0 = arith.constant 0 : i32
    %c0_i32_1 = arith.constant 0 : i32
    return %c0_i32, %c0_i32_0 : i32, i32
  }
  func.func @transform_9(%arg0: i32) -> (i32, i32) {
    %c0_i32 = arith.constant 0 : i32
    %c0_i32_0 = arith.constant 0 : i32
    return %c0_i32, %arg0 : i32, i32
  }
}

</mosaic_0001>

<bundles_post_ra>
// kernel: tpu_custom_call.1
= control target key start
LH: loop header
LB: loop body
LE: loop exit
PB: predicated region body
PF: predicated region fallthrough
CT: control target
= control target key end

     0   :  { %s2106_s0 = inlined_call_operand.vmem [shape: f32[1,256], index: 0, kind: input, shape index: {}]   ;;  %s2107_s1 = inlined_call_operand.vmem [shape: f32[128,1], index: 1, kind: input, shape index: {}]   ;;  %s2108_s2 = inlined_call_operand.vmem [shape: f32[128,1], index: 2, kind: input, shape index: {}]   ;;  %s2109_s3 = inlined_call_operand.vmem [shape: bf16[128,128], index: 3, kind: input, shape index: {}]   ;;  %s2110_s4 = inlined_call_operand.vmem [shape: f32[128,1], index: 4, kind: input, shape index: {}]   ;;  %s2111_s5 = inlined_call_operand.vmem [shape: bf16[128,128], index: 5, kind: input, shape index: {}]   ;;  %s2112_s6 = inlined_call_operand.vmem [shape: f32[128,1], index: 6, kind: input, shape index: {}]   ;;  %s2113_s7 = inlined_call_operand.vmem [shape: f32[128,1], index: 7, kind: input, shape index: {}]   ;;  %s2114_s8 = inlined_call_operand.<no memory space> [shape: f32[1,1], index: 8, kind: input, shape index: {}]   ;;  %s2115_s9 = inlined_call_operand.hbm [shape: f32[1,256], index: 9, kind: output, shape index: {}]  }
   0x1   :  { %v14_v0 = vstv %s2114_s8 }
   0x2   :  { %15 = vst [vmem:[#allocation2] sm:$0x1] %v14_v0 }
   0x3   :  { %16 = vsyncpa [#allocation4], 0 }
   0x4   :  { %18 = vsyncpa [#allocation4 + $0x1], 0  ;;  %s1691_s11 = smov 0   ;;  %s1693_s12 = smov 0  }
   0x5   :  { %s1695_s13 = smov 0   ;;  %s1697_s14 = smov 0  }
   0x6 LB: > { %s1712_s8 = sadd.s32 4294967295, %s1634_s14   ;;  %s1394_s15 = sadd.s32 4294967294, %s1634_s14   ;;  %s1634_s14 = sphi %s1697_s14, %s2121_s14   ;;  %s1630_s13 = sphi %s1695_s13, %s2120_s13   ;;  %s1626_s12 = sphi %s1693_s12, %s2119_s12   ;;  %s1622_s11 = sphi %s1691_s11, %s2118_s11  }
   0x7   : > { %s1716_s16 = sadd.s32 1, %s1634_s14   ;;  %s225_s17 = sadd.s32 1, %s1630_s13 }
   0x8   : > { %s222_s18 = ssub.s32 %s1634_s14, %s1716_s16  ;;  %p235_p0 = scmp.ne.s32.totalorder %s1630_s13, %s1626_s12 }
   0x9   : > { %p223_p1 = scmp.eq.s32.totalorder %s222_s18, 0  ;;  %p236_p2 = scmp.eq.s32.totalorder %s1712_s8, 1 }
   0xa   : > { %p241_p3 = scmp.ne.s32.totalorder %s1626_s12, %s1622_s11  ;;  %p242_p4 = scmp.eq.s32.totalorder %s1394_s15, 1 }
   0xb   : > { %s1727_s19 = scalar_select %p223_p1, %s1630_s13, %s225_s17  }
   0xc   : > { %p1729_p5 = por %p236_p2, %p235_p0  ;;  %p1733_p6 = por %p242_p4, %p241_p3 }
   0xd   : > { %p1397_p7 = scmp.ge.s32.totalorder %s1634_s14, 1  ;;  %p290_p8 = scmp.lt.s32.totalorder %s1634_s14, 3 }
   0xf   : > { %p291_p9 = pnand %p1397_p7, %p290_p8 }
  0x10   : > { %v446_v1 = vld [vmem:[%s2108_s2] sm:$0xff] (!%p291_p9)  ;;  %v1636_v3 = vmov (!%p291_p9), 0   ;;  %v447_v4 = vld [vmem:[%s2108_s2 + $0x8] sm:$0xff] (!%p291_p9)  ;;  %v331_v6 = vld [vmem:[%s2107_s1 + $0x18] sm:$0xff] (!%p291_p9)  ;;  %p323_p10 = scmp.lt.s32.totalorder (!%p291_p9), %s1712_s8, 1  ;;  %s321_s23 = sand.u32 (!%p291_p9), 1, %s1626_s12  }
  0x11   : > { %294 = sbr.rel (%p291_p9) target bundleno = 754 (0x2f2), region = 56  ;;  %v328_v2 = vld [vmem:[%s2107_s1] sm:$0xff] (!%p291_p9)  ;;  %1555 = vset.pattern.permute.xlu1 (!%p291_p9), %v1636_v3  ;;  %1554 = vset.pattern.permute.xlu0 (!%p291_p9), %v1636_v3  ;;  %v329_v5 = vld [vmem:[%s2107_s1 + $0x8] sm:$0xff] (!%p291_p9)  ;;  %v330_v7 = vld [vmem:[%s2107_s1 + $0x10] sm:$0xff] (!%p291_p9)  ;;  %s1415_s24 = sshll.u32 (!%p291_p9), %s1712_s8, 4 }
  0x12   : > { %464 = vperm.xlu1 (!%p291_p9), %1555, %v446_v1   ;;  %346 = vperm.xlu0 (!%p291_p9), %1554, %v328_v2   ;;  %v449_v8 = vld [vmem:[%s2108_s2 + $0x18] sm:$0xff] (!%p291_p9)  ;;  %v448_v9 = vld [vmem:[%s2108_s2 + $0x10] sm:$0xff] (!%p291_p9)  ;;  %v333_v10 = vld [vmem:[%s2107_s1 + $0x28] sm:$0xff] (!%p291_p9)  ;;  %s2064_s29 = scalar_lea.hbm (!%p291_p9), %s2115_s9, %s1415_s24  ;;  %s1330_s30 = scalar_lea.sflag (!%p291_p9), [#allocation4], %s321_s23 }
  0x13   : > { %v332_v11 = vld [vmem:[%s2107_s1 + $0x20] sm:$0xff] (!%p291_p9)  ;;  %v451_v12 = vld [vmem:[%s2108_s2 + $0x28] sm:$0xff] (!%p291_p9)  ;;  %v335_v14 = vld [vmem:[%s2107_s1 + $0x38] sm:$0xff] (!%p291_p9) }
  0x14   : > { %v450_v13 = vld [vmem:[%s2108_s2 + $0x20] sm:$0xff] (!%p291_p9)  ;;  %v334_v15 = vld [vmem:[%s2107_s1 + $0x30] sm:$0xff] (!%p291_p9)  ;;  %v453_v16 = vld [vmem:[%s2108_s2 + $0x38] sm:$0xff] (!%p291_p9) }
  0x15   : > { %v452_v17 = vld [vmem:[%s2108_s2 + $0x30] sm:$0xff] (!%p291_p9)  ;;  %v337_v18 = vld [vmem:[%s2107_s1 + $0x48] sm:$0xff] (!%p291_p9)  ;;  %v336_v19 = vld [vmem:[%s2107_s1 + $0x40] sm:$0xff] (!%p291_p9) }
  0x16   : > { %469 = vperm.xlu1 (!%p291_p9), %1555, %v447_v4   ;;  %351 = vperm.xlu0 (!%p291_p9), %1554, %v329_v5   ;;  %v455_v20 = vld [vmem:[%s2108_s2 + $0x48] sm:$0xff] (!%p291_p9)  ;;  %v454_v21 = vld [vmem:[%s2108_s2 + $0x40] sm:$0xff] (!%p291_p9)  ;;  %v339_v22 = vld [vmem:[%s2107_s1 + $0x58] sm:$0xff] (!%p291_p9) }
  0x17   : > { %v338_v23 = vld [vmem:[%s2107_s1 + $0x50] sm:$0xff] (!%p291_p9)  ;;  %v457_v24 = vld [vmem:[%s2108_s2 + $0x58] sm:$0xff] (!%p291_p9)  ;;  %v341_v26 = vld [vmem:[%s2107_s1 + $0x68] sm:$0xff] (!%p291_p9) }
  0x18   : > { %v456_v25 = vld [vmem:[%s2108_s2 + $0x50] sm:$0xff]  ;;  %v340_v27 = vld [vmem:[%s2107_s1 + $0x60] sm:$0xff]  ;;  %v459_v28 = vld [vmem:[%s2108_s2 + $0x68] sm:$0xff]  ;;  %s324_s10 = scalar_select %p323_p10, %s1712_s8, 1 }
  0x19   : > { %v458_v29 = vld [vmem:[%s2108_s2 + $0x60] sm:$0xff]  ;;  %v343_v30 = vld [vmem:[%s2107_s1 + $0x78] sm:$0xff]  ;;  %v342_v31 = vld [vmem:[%s2107_s1 + $0x70] sm:$0xff]  ;;  %s1637_s8 = smov [#allocation3]  }
  0x1a   : > { %361 = vperm.xlu1 %1555, %v331_v6   ;;  %356 = vperm.xlu0 %1554, %v330_v7   ;;  %v461_v32 = vld [vmem:[%s2108_s2 + $0x78] sm:$0xff]  ;;  %v460_v33 = vld [vmem:[%s2108_s2 + $0x70] sm:$0xff]  ;;  %v615_v34 = vld [vmem:[%s2110_s4 + $0x8] sm:$0xff]  ;;  %s325_s25 = scalar_lea.vmem %s2106_s0, %s324_s10  ;;  %s1576_s15 = sshll.u32 %s1637_s8, 4  ;;  %s1577_s15 = int_to_ptr.vmem [resolvable:$false] %s1576_s15 }
  0x1b   : > { %v614_v35 = vld [vmem:[%s2110_s4] sm:$0xff]  ;;  %v617_v36 = vld [vmem:[%s2110_s4 + $0x18] sm:$0xff]  ;;  %v616_v37 = vld [vmem:[%s2110_s4 + $0x10] sm:$0xff]  ;;  %s1578_s17 = scalar_lea.vmem %s1577_s15, 32 }
  0x1c   : > { %v619_v38 = vld [vmem:[%s2110_s4 + $0x28] sm:$0xff]  ;;  %v618_v39 = vld [vmem:[%s2110_s4 + $0x20] sm:$0xff]  ;;  %v621_v41 = vld [vmem:[%s2110_s4 + $0x38] sm:$0xff] }
  0x1d   : > { %v1556_v40 = vld [vmem:[%s2109_s3] sm:$0xff]   ;;  %v620_v42 = vld [vmem:[%s2110_s4 + $0x30] sm:$0xff]  ;;  %v623_v43 = vld [vmem:[%s2110_s4 + $0x48] sm:$0xff] }
  0x1e   : > { %479 = vperm.xlu1 %1555, %v449_v8   ;;  %474 = vperm.xlu0 %1554, %v448_v9   ;;  %v622_v44 = vld [vmem:[%s2110_s4 + $0x40] sm:$0xff]  ;;  %v625_v45 = vld [vmem:[%s2110_s4 + $0x58] sm:$0xff]  ;;  %v624_v46 = vld [vmem:[%s2110_s4 + $0x50] sm:$0xff] }
  0x1f   : > { %1466 = vmatprep.mubr.bf16.mxu0 %v1556_v40  ;;  %v627_v47 = vld [vmem:[%s2110_s4 + $0x68] sm:$0xff]  ;;  %v626_v48 = vld [vmem:[%s2110_s4 + $0x60] sm:$0xff]  ;;  %v629_v49 = vld [vmem:[%s2110_s4 + $0x78] sm:$0xff] }
  0x20   : > { %v628_v50 = vld [vmem:[%s2110_s4 + $0x70] sm:$0xff]  ;;  %v912_v51 = vld [vmem:[%s2112_s6 + $0x8] sm:$0xff]  ;;  %v911_v52 = vld [vmem:[%s2112_s6] sm:$0xff] }
  0x21   : > { %v914_v53 = vld [vmem:[%s2112_s6 + $0x18] sm:$0xff]  ;;  %v913_v54 = vld [vmem:[%s2112_s6 + $0x10] sm:$0xff]  ;;  %v1184_v55 = vld [vmem:[%s2113_s7] sm:$0xff] }
  0x22   : > { %371 = vperm.xlu1 %1555, %v333_v10   ;;  %366 = vperm.xlu0 %1554, %v332_v11   ;;  %v915_v56 = vld [vmem:[%s2112_s6 + $0x20] sm:$0xff]  ;;  %v916_v57 = vld [vmem:[%s2112_s6 + $0x28] sm:$0xff]  ;;  %v917_v59 = vld [vmem:[%s2112_s6 + $0x30] sm:$0xff] }
  0x23   : > { %v1185_v58 = vld [vmem:[%s2113_s7 + $0x8] sm:$0xff]  ;;  %v1186_v60 = vld [vmem:[%s2113_s7 + $0x10] sm:$0xff]  ;;  %v918_v61 = vld [vmem:[%s2112_s6 + $0x38] sm:$0xff] }
  0x24   : > { %v1187_v62 = vld [vmem:[%s2113_s7 + $0x18] sm:$0xff]  ;;  %v919_v63 = vld [vmem:[%s2112_s6 + $0x40] sm:$0xff]  ;;  %v920_v1 = vld [vmem:[%s2112_s6 + $0x48] sm:$0xff] }
  0x25   : > { %v1188_v0 = vld [vmem:[%s2113_s7 + $0x20] sm:$0xff]  ;;  %v1189_v2 = vld [vmem:[%s2113_s7 + $0x28] sm:$0xff]  ;;  %v921_v4 = vld [vmem:[%s2112_s6 + $0x50] sm:$0xff] }
  0x26   : > { %489 = vperm.xlu1 %1555, %v451_v12   ;;  %484 = vperm.xlu0 %1554, %v450_v13   ;;  %v1939_v3 = vld [vmem:[%s325_s25] ss:$0 sm:$0xff]  ;;  %v1190_v5 = vld [vmem:[%s2113_s7 + $0x30] sm:$0xff]  ;;  %v922_v9 = vld [vmem:[%s2112_s6 + $0x58] sm:$0xff]  ;;  %s322_s25 = scalar_lea.vmem [#allocation3], %s321_s23 }
  0x27   : > { %v1191_v10 = vld [vmem:[%s2113_s7 + $0x38] sm:$0xff]  ;;  %s1342_s26 = sshll.u32 %s322_s25, 4  ;;  %s2066_s26 = int_to_ptr.vmem [resolvable:$true] %s1342_s26 }
  0x28   : > { %s1572_s10 = scalar_lea.vmem %s2066_s26, 16  ;;  %p1579_p0 = scmp.lt.s32.totalorder %s2066_s26, %s1577_s15 }
  0x29   : > { %p1573_p11 = scmp.ne.s32.totalorder %s2066_s26, %s1572_s10  ;;  %p1580_p1 = scmp.lt.s32.totalorder %s1578_s17, %s1572_s10 }
  0x2a   : > { %381 = vperm.xlu1 %1555, %v335_v14   ;;  %376 = vperm.xlu0 %1554, %v334_v15   ;;  %v923_v15 = vld [vmem:[%s2112_s6 + $0x60] sm:$0xff] }
  0x2b   : > { %p1574_p12 = pnand %p1573_p11, %p1729_p5  ;;  %p1581_p2 = por %p1580_p1, %p1579_p0 }
  0x2d   : > { %p1575_p13 = pneg %p1574_p12 }
  0x2e   : > { %499 = vperm.xlu1 %1555, %v453_v16   ;;  %494 = vperm.xlu0 %1554, %v452_v17   ;;  %v1192_v16 = vld [vmem:[%s2113_s7 + $0x40] sm:$0xff] }
  0x2f   : > { %p1582_p3 = pnand %p1581_p2, %p1575_p13 }
  0x32   : > { %391 = vperm.xlu1 %1555, %v337_v18   ;;  %386 = vperm.xlu0 %1554, %v336_v19  }
  0x36   : > { %509 = vperm.xlu1 %1555, %v455_v20   ;;  %504 = vperm.xlu0 %1554, %v454_v21  }
  0x3a   : > { %401 = vperm.xlu1 %1555, %v339_v22   ;;  %396 = vperm.xlu0 %1554, %v338_v23   ;;  %v924_v22 = vld [vmem:[%s2112_s6 + $0x68] sm:$0xff] }
  0x3b   : > { %v1193_v23 = vld [vmem:[%s2113_s7 + $0x48] sm:$0xff] }
  0x3e   : > { %519 = vperm.xlu1 %1555, %v457_v24   ;;  %514 = vperm.xlu0 %1554, %v456_v25  }
  0x42   : > { %411 = vperm.xlu1 %1555, %v341_v26   ;;  %406 = vperm.xlu0 %1554, %v340_v27  }
  0x46   : > { %529 = vperm.xlu1 %1555, %v459_v28   ;;  %524 = vperm.xlu0 %1554, %v458_v29  }
  0x4a   : > { %421 = vperm.xlu1 %1555, %v343_v30   ;;  %416 = vperm.xlu0 %1554, %v342_v31  }
  0x4e   : > { %539 = vperm.xlu1 %1555, %v461_v32   ;;  %534 = vperm.xlu0 %1554, %v460_v33   ;;  %v925_v33 = vld [vmem:[%s2112_s6 + $0x70] sm:$0xff] }
  0x52   : > { %637 = vperm.xlu1 %1555, %v615_v34   ;;  %632 = vperm.xlu0 %1554, %v614_v35  }
  0x56   : > { %647 = vperm.xlu1 %1555, %v617_v36   ;;  %642 = vperm.xlu0 %1554, %v616_v37   ;;  %v1194_v36 = vld [vmem:[%s2113_s7 + $0x50] sm:$0xff] }
  0x5a   : > { %657 = vperm.xlu1 %1555, %v619_v38   ;;  %652 = vperm.xlu0 %1554, %v618_v39  }
  0x5e   : > { %667 = vperm.xlu1 %1555, %v621_v41   ;;  %662 = vperm.xlu0 %1554, %v620_v42   ;;  %v926_v41 = vld [vmem:[%s2112_s6 + $0x78] sm:$0xff] }
  0x62   : > { %677 = vperm.xlu1 %1555, %v623_v43   ;;  %672 = vperm.xlu0 %1554, %v622_v44   ;;  %v1195_v44 = vld [vmem:[%s2113_s7 + $0x58] sm:$0xff] }
  0x66   : > { %687 = vperm.xlu1 %1555, %v625_v45   ;;  %682 = vperm.xlu0 %1554, %v624_v46  }
  0x6a   : > { %697 = vperm.xlu1 %1555, %v627_v47   ;;  %692 = vperm.xlu0 %1554, %v626_v48  }
  0x6e   : > { %707 = vperm.xlu1 %1555, %v629_v49   ;;  %702 = vperm.xlu0 %1554, %v628_v50   ;;  %v1197_v50 = vld [vmem:[%s2113_s7 + $0x68] sm:$0xff] }
  0x72   : > { %934 = vperm.xlu1 %1555, %v912_v51   ;;  %929 = vperm.xlu0 %1554, %v911_v52  }
  0x76   : > { %944 = vperm.xlu1 %1555, %v914_v53   ;;  %939 = vperm.xlu0 %1554, %v913_v54   ;;  %v1196_v53 = vld [vmem:[%s2113_s7 + $0x60] sm:$0xff] }
  0x7a   : > { %1202 = vperm.xlu1 %1555, %v1184_v55   ;;  %949 = vperm.xlu0 %1554, %v915_v56  }
  0x7e   : > { %954 = vperm.xlu1 %1555, %v916_v57   ;;  %1207 = vperm.xlu0 %1554, %v1185_v58   ;;  %v1199_v58 = vld [vmem:[%s2113_s7 + $0x78] sm:$0xff] }
  0x82   : > { %959 = vperm.xlu1 %1555, %v917_v59   ;;  %1212 = vperm.xlu0 %1554, %v1186_v60  }
  0x86   : > { %964 = vperm.xlu1 %1555, %v918_v61   ;;  %1217 = vperm.xlu0 %1554, %v1187_v62   ;;  %v1198_v61 = vld [vmem:[%s2113_s7 + $0x70] sm:$0xff] }
  0x8a   : > { %969 = vperm.xlu1 %1555, %v919_v63   ;;  %1222 = vperm.xlu0 %1554, %v1188_v0  }
  0x8e   : > { %974 = vperm.xlu1 %1555, %v920_v1   ;;  %1227 = vperm.xlu0 %1554, %v1189_v2  }
  0x91   : > { %v465_v6 = vpop.permute.xlu1 %464  ;;  %v347_v7 = vpop.permute.xlu0 %346 }
  0x92   : > { %v430_v8 = vmul.f32 %v1939_v3, %v347_v7  ;;  %979 = vperm.xlu1 %1555, %v921_v4   ;;  %1232 = vperm.xlu0 %1554, %v1190_v5  }
  0x94   : > { %v542_v11 = vadd.f32 %v465_v6, %v430_v8  ;;  %v1317_v6 = vld [vmem:[#allocation2] sm:$0x1] }
  0x95   : > { %v470_v12 = vpop.permute.xlu1 %469  ;;  %v352_v13 = vpop.permute.xlu0 %351 }
  0x96   : > { %v431_v14 = vmul.f32 %v1939_v3, %v352_v13  ;;  %984 = vperm.xlu1 %1555, %v922_v9   ;;  %1237 = vperm.xlu0 %1554, %v1191_v10   ;;  %v558_v17 = vmul.f32 0.2, %v542_v11 }
  0x98   : > { %v543_v18 = vadd.f32 %v470_v12, %v431_v14  ;;  %v574_v26 = vmax.f32 %v542_v11, %v558_v17 }
  0x99   : > { %v362_v19 = vpop.permute.xlu1 %361  ;;  %v357_v20 = vpop.permute.xlu0 %356 }
  0x9a   : > { %v559_v21 = vmul.f32 0.2, %v543_v18  ;;  %989 = vperm.xlu1 %1555, %v923_v15   ;;  %1242 = vperm.xlu0 %1554, %v1192_v16   ;;  %v433_v24 = vmul.f32 %v1939_v3, %v362_v19  ;;  %v432_v25 = vmul.f32 %v1939_v3, %v357_v20 }
  0x9c   : > { %v575_v27 = vmax.f32 %v543_v18, %v559_v21 }
  0x9d   : > { %v480_v28 = vpop.permute.xlu1 %479  ;;  %v475_v29 = vpop.permute.xlu0 %474 }
  0x9e   : > { %v545_v30 = vadd.f32 %v480_v28, %v433_v24  ;;  %v544_v31 = vadd.f32 %v475_v29, %v432_v25  ;;  %994 = vperm.xlu1 %1555, %v924_v22   ;;  %1247 = vperm.xlu0 %1554, %v1193_v23   ;;  %v606_v32 = vpack.c.bf16 %v575_v27, %v574_v26 }
  0xa0   : > { %v561_v34 = vmul.f32 0.2, %v545_v30  ;;  %v560_v35 = vmul.f32 0.2, %v544_v31  ;;  %1450 = vmatprep.subr.bf16.mxu0 %v606_v32 }
  0xa1   : > { %v372_v37 = vpop.permute.xlu1 %371  ;;  %v367_v38 = vpop.permute.xlu0 %366  ;;  %1451 = vmatpush3.bf16.msra.mxu0 %v606_v32 }
  0xa2   : > { %v577_v39 = vmax.f32 %v545_v30, %v561_v34  ;;  %v576_v40 = vmax.f32 %v544_v31, %v560_v35  ;;  %999 = vperm.xlu1 %1555, %v925_v33   ;;  %1252 = vperm.xlu0 %1554, %v1194_v36   ;;  %v435_v42 = vmul.f32 %v1939_v3, %v372_v37 }
  0xa3   : > { %v434_v43 = vmul.f32 %v1939_v3, %v367_v38 }
  0xa4   : > { %v607_v45 = vpack.c.bf16 %v577_v39, %v576_v40 }
  0xa5   : > { %v490_v46 = vpop.permute.xlu1 %489  ;;  %v485_v47 = vpop.permute.xlu0 %484 }
  0xa6   : > { %v547_v48 = vadd.f32 %v490_v46, %v435_v42  ;;  %v546_v49 = vadd.f32 %v485_v47, %v434_v43  ;;  %1004 = vperm.xlu1 %1555, %v926_v41   ;;  %1452 = vmatprep.subr.bf16.mxu0 %v607_v45 }
  0xa7   : > { %1257 = vperm.xlu0 %1554, %v1195_v44   ;;  %1453 = vmatpush3.bf16.msra.mxu0 %v607_v45 }
  0xa8   : > { %v563_v51 = vmul.f32 0.2, %v547_v48  ;;  %v562_v52 = vmul.f32 0.2, %v546_v49 }
  0xa9   : > { %v382_v54 = vpop.permute.xlu1 %381  ;;  %v377_v55 = vpop.permute.xlu0 %376 }
  0xaa   : > { %v579_v56 = vmax.f32 %v547_v48, %v563_v51  ;;  %v578_v57 = vmax.f32 %v546_v49, %v562_v52  ;;  %1267 = vperm.xlu1 %1555, %v1197_v50   ;;  %v437_v59 = vmul.f32 %v1939_v3, %v382_v54  ;;  %v436_v60 = vmul.f32 %v1939_v3, %v377_v55 }
  0xab   : > { %1262 = vperm.xlu0 %1554, %v1196_v53  }
  0xac   : > { %v608_v62 = vpack.c.bf16 %v579_v56, %v578_v57 }
  0xad   : > { %v500_v63 = vpop.permute.xlu1 %499  ;;  %v495_v0 = vpop.permute.xlu0 %494 }
  0xae   : > { %v549_v1 = vadd.f32 %v500_v63, %v437_v59  ;;  %v548_v2 = vadd.f32 %v495_v0, %v436_v60  ;;  %1277 = vperm.xlu1 %1555, %v1199_v58   ;;  %1454 = vmatprep.subr.bf16.mxu0 %v608_v62  ;;  %v1559_v63 = vld [vmem:[%s2109_s3 + $0x18] sm:$0xff]   ;;  %v1560_v0 = vld [vmem:[%s2109_s3 + $0x20] sm:$0xff]  }
  0xaf   : > { %1272 = vperm.xlu0 %1554, %v1198_v61   ;;  %1455 = vmatpush3.bf16.msra.mxu0 %v608_v62  ;;  %v1557_v62 = vld [vmem:[%s2109_s3 + $0x8] sm:$0xff]  }
  0xb0   : > { %v565_v4 = vmul.f32 0.2, %v549_v1  ;;  %v564_v5 = vmul.f32 0.2, %v548_v2 }
  0xb1   : > { %v392_v7 = vpop.permute.xlu1 %391  ;;  %v387_v8 = vpop.permute.xlu0 %386 }
  0xb2   : > { %v581_v9 = vmax.f32 %v549_v1, %v565_v4  ;;  %v580_v10 = vmax.f32 %v548_v2, %v564_v5  ;;  %v439_v11 = vmul.f32 %v1939_v3, %v392_v7  ;;  %v438_v12 = vmul.f32 %v1939_v3, %v387_v8  ;;  %v1561_v1 = vld [vmem:[%s2109_s3 + $0x28] sm:$0xff]   ;;  %v1562_v2 = vld [vmem:[%s2109_s3 + $0x30] sm:$0xff]   ;;  %v1563_v4 = vld [vmem:[%s2109_s3 + $0x38] sm:$0xff]  }
  0xb3   : > { %1320 = vperm.xlu0 %1554, %v1317_v6   ;;  %v1564_v5 = vld [vmem:[%s2111_s5] sm:$0xff]  }
  0xb4   : > { %v609_v13 = vpack.c.bf16 %v581_v9, %v580_v10  ;;  %1498 = vmatprep.mubr.bf16.mxu1 %v1564_v5 }
  0xb5   : > { %v510_v14 = vpop.permute.xlu1 %509  ;;  %v505_v15 = vpop.permute.xlu0 %504 }
  0xb6   : > { %v551_v16 = vadd.f32 %v510_v14, %v439_v11  ;;  %v550_v17 = vadd.f32 %v505_v15, %v438_v12  ;;  %1456 = vmatprep.subr.bf16.mxu0 %v609_v13 }
  0xb7   : > { %1457 = vmatpush3.bf16.msra.mxu0 %v609_v13 }
  0xb8   : > { %v567_v18 = vmul.f32 0.2, %v551_v16  ;;  %v566_v19 = vmul.f32 0.2, %v550_v17 }
  0xb9   : > { %v402_v20 = vpop.permute.xlu1 %401  ;;  %v397_v21 = vpop.permute.xlu0 %396 }
  0xba   : > { %v583_v22 = vmax.f32 %v551_v16, %v567_v18  ;;  %v582_v23 = vmax.f32 %v550_v17, %v566_v19  ;;  %v441_v24 = vmul.f32 %v1939_v3, %v402_v20  ;;  %v440_v25 = vmul.f32 %v1939_v3, %v397_v21 }
  0xbc   : > { %v610_v26 = vpack.c.bf16 %v583_v22, %v582_v23 }
  0xbd   : > { %v520_v27 = vpop.permute.xlu1 %519  ;;  %v515_v28 = vpop.permute.xlu0 %514 }
  0xbe   : > { %v553_v29 = vadd.f32 %v520_v27, %v441_v24  ;;  %v552_v30 = vadd.f32 %v515_v28, %v440_v25  ;;  %1458 = vmatprep.subr.bf16.mxu0 %v610_v26 }
  0xbf   : > { %1459 = vmatpush3.bf16.msra.mxu0 %v610_v26 }
  0xc0   : > { %v569_v31 = vmul.f32 0.2, %v553_v29  ;;  %v568_v32 = vmul.f32 0.2, %v552_v30 }
  0xc1   : > { %v412_v33 = vpop.permute.xlu1 %411  ;;  %v407_v34 = vpop.permute.xlu0 %406 }
  0xc2   : > { %v585_v35 = vmax.f32 %v553_v29, %v569_v31  ;;  %v584_v36 = vmax.f32 %v552_v30, %v568_v32  ;;  %v443_v37 = vmul.f32 %v1939_v3, %v412_v33  ;;  %v442_v38 = vmul.f32 %v1939_v3, %v407_v34 }
  0xc4   : > { %v611_v39 = vpack.c.bf16 %v585_v35, %v584_v36 }
  0xc5   : > { %v530_v40 = vpop.permute.xlu1 %529  ;;  %v525_v41 = vpop.permute.xlu0 %524 }
  0xc6   : > { %v555_v42 = vadd.f32 %v530_v40, %v443_v37  ;;  %v554_v43 = vadd.f32 %v525_v41, %v442_v38  ;;  %1460 = vmatprep.subr.bf16.mxu0 %v611_v39 }
  0xc7   : > { %1461 = vmatpush3.bf16.msra.mxu0 %v611_v39 }
  0xc8   : > { %v571_v44 = vmul.f32 0.2, %v555_v42  ;;  %v570_v45 = vmul.f32 0.2, %v554_v43 }
  0xc9   : > { %v422_v46 = vpop.permute.xlu1 %421  ;;  %v417_v47 = vpop.permute.xlu0 %416 }
  0xca   : > { %v587_v48 = vmax.f32 %v555_v42, %v571_v44  ;;  %v586_v49 = vmax.f32 %v554_v43, %v570_v45  ;;  %v445_v50 = vmul.f32 %v1939_v3, %v422_v46  ;;  %v444_v51 = vmul.f32 %v1939_v3, %v417_v47  ;;  %v1558_v3 = vld [vmem:[%s2109_s3 + $0x10] sm:$0xff]  }
  0xcc   : > { %v612_v52 = vpack.c.bf16 %v587_v48, %v586_v49 }
  0xcd   : > { %v540_v53 = vpop.permute.xlu1 %539  ;;  %v535_v54 = vpop.permute.xlu0 %534 }
  0xce   : > { %v557_v55 = vadd.f32 %v540_v53, %v445_v50  ;;  %v556_v56 = vadd.f32 %v535_v54, %v444_v51  ;;  %1462 = vmatprep.subr.bf16.mxu0 %v612_v52 }
  0xcf   : > { %1463 = vmatpush3.bf16.msra.mxu0 %v612_v52 }
  0xd0   : > { %v573_v57 = vmul.f32 0.2, %v557_v55  ;;  %v572_v58 = vmul.f32 0.2, %v556_v56 }
  0xd1   : > { %v633_v6 = vpop.permute.xlu0 %632  ;;  %v638_v7 = vpop.permute.xlu1 %637 }
  0xd2   : > { %v589_v59 = vmax.f32 %v557_v55, %v573_v57  ;;  %v588_v60 = vmax.f32 %v556_v56, %v572_v58 }
  0xd4   : > { %v613_v61 = vpack.c.bf16 %v589_v59, %v588_v60 }
  0xd5   : > { %v643_v8 = vpop.permute.xlu0 %642  ;;  %v648_v9 = vpop.permute.xlu1 %647 }
  0xd6   : > { %1464 = vmatprep.subr.bf16.mxu0 %v613_v61 }
  0xd7   : > { %1465 = vmatpush3.bf16.msra.mxu0 %v613_v61 }
  0xd9   : > { %v653_v10 = vpop.permute.xlu0 %652  ;;  %v658_v11 = vpop.permute.xlu1 %657 }
  0xda   : > { %1467 = vmatmul.mubr.bf16.vlgmr.msra.gmra.mrb[0].mxu0 %v1557_v62 }
  0xdb   : > { %1470 = vmatprep.mubr.bf16.mxu0 %v1558_v3 }
  0xdd   : > { %v663_v12 = vpop.permute.xlu0 %662  ;;  %v668_v16 = vpop.permute.xlu1 %667 }
  0xe1   : > { %v673_v25 = vpop.permute.xlu0 %672  ;;  %v678_v29 = vpop.permute.xlu1 %677 }
  0xe2   : > { %1471 = vmatmul.mubr.bf16.gmra.mrb[4].mxu0 %v1559_v63 }
  0xe3   : > { %1474 = vmatprep.mubr.bf16.mxu0 %v1560_v0 }
  0xe5   : > { %v683_v42 = vpop.permute.xlu0 %682  ;;  %v688_v46 = vpop.permute.xlu1 %687 }
  0xe9   : > { %v693_v56 = vpop.permute.xlu0 %692  ;;  %v698_v3 = vpop.permute.xlu1 %697 }
  0xea   : > { %1475 = vmatmul.mubr.bf16.gmra.mrb[8].mxu0 %v1561_v1 }
  0xeb   : > { %1478 = vmatprep.mubr.bf16.mxu0 %v1562_v2 }
  0xf2   : > { %1479 = vmatmul.mubr.bf16.gmra.mrb[12].mxu0 %v1563_v4 }
 0x1ad   : > { %v1468_v13 = vpop.f32.mrb[0].mxu0 }
 0x1ae   : > { %v801_v14 = vadd.f32 %v1468_v13, %v643_v8  ;;  %v792_v15 = vpop.f32.mrb[1].mxu0  ;;  %v708_v13 = vpop.permute.xlu1 %707 }
 0x1af   : > { %v793_v17 = vadd.f32 %v792_v15, %v633_v6  ;;  %v1469_v18 = vpop.f32.mrb[2].mxu0  ;;  %v703_v6 = vpop.permute.xlu0 %702 }
 0x1b0   : > { %v857_v19 = vmul.f32 0.2, %v801_v14  ;;  %v804_v20 = vadd.f32 %v1469_v18, %v648_v9  ;;  %v795_v21 = vpop.f32.mrb[3].mxu0 }
 0x1b1   : > { %v855_v22 = vmul.f32 0.2, %v793_v17  ;;  %v796_v23 = vadd.f32 %v795_v21, %v638_v7 }
 0x1b2   : > { %v858_v24 = vmul.f32 0.2, %v804_v20  ;;  %v873_v27 = vmax.f32 %v801_v14, %v857_v19 }
 0x1b3   : > { %v856_v26 = vmul.f32 0.2, %v796_v23  ;;  %v871_v30 = vmax.f32 %v793_v17, %v855_v22 }
 0x1b4   : > { %v874_v28 = vmax.f32 %v804_v20, %v858_v24 }
 0x1b5   : > { %v872_v31 = vmax.f32 %v796_v23, %v856_v26  ;;  %v1472_v32 = vpop.f32.mrb[4].mxu0 }
 0x1b6   : > { %v817_v33 = vadd.f32 %v1472_v32, %v663_v12  ;;  %v808_v34 = vpop.f32.mrb[5].mxu0  ;;  %v904_v35 = vpack.c.bf16 %v874_v28, %v873_v27  ;;  %v1567_v32 = vld [vmem:[%s2111_s5 + $0x18] sm:$0xff]  }
 0x1b7   : > { %v809_v36 = vadd.f32 %v808_v34, %v653_v10  ;;  %v1473_v37 = vpop.f32.mrb[6].mxu0  ;;  %v903_v38 = vpack.c.bf16 %v872_v31, %v871_v30  ;;  %v1565_v30 = vld [vmem:[%s2111_s5 + $0x8] sm:$0xff]   ;;  %v1566_v31 = vld [vmem:[%s2111_s5 + $0x10] sm:$0xff]  }
 0x1b8   : > { %v861_v39 = vmul.f32 0.2, %v817_v33  ;;  %v820_v40 = vadd.f32 %v1473_v37, %v668_v16  ;;  %v811_v41 = vpop.f32.mrb[7].mxu0  ;;  %v1569_v34 = vld [vmem:[%s2111_s5 + $0x28] sm:$0xff]   ;;  %v930_v37 = vpop.permute.xlu0 %929 }
 0x1b9   : > { %v859_v43 = vmul.f32 0.2, %v809_v36  ;;  %v812_v44 = vadd.f32 %v811_v41, %v658_v11  ;;  %1482 = vmatprep.subr.bf16.mxu1 %v903_v38 }
 0x1ba   : > { %v862_v45 = vmul.f32 0.2, %v820_v40  ;;  %1483 = vmatpush3.bf16.msra.mxu1 %v903_v38  ;;  %v877_v48 = vmax.f32 %v817_v33, %v861_v39  ;;  %v1568_v33 = vld [vmem:[%s2111_s5 + $0x20] sm:$0xff]   ;;  %v935_v38 = vpop.permute.xlu1 %934 }
 0x1bb   : > { %v860_v47 = vmul.f32 0.2, %v812_v44  ;;  %1484 = vmatprep.subr.bf16.mxu1 %v904_v35  ;;  %v875_v50 = vmax.f32 %v809_v36, %v859_v43  ;;  %v1571_v36 = vld [vmem:[%s2111_s5 + $0x38] sm:$0xff]  }
 0x1bc   : > { %v878_v49 = vmax.f32 %v820_v40, %v862_v45  ;;  %v940_v39 = vpop.permute.xlu0 %939 }
 0x1bd   : > { %v876_v51 = vmax.f32 %v812_v44, %v860_v47  ;;  %v1476_v52 = vpop.f32.mrb[8].mxu0 }
 0x1be   : > { %v833_v53 = vadd.f32 %v1476_v52, %v683_v42  ;;  %v824_v54 = vpop.f32.mrb[9].mxu0  ;;  %1485 = vmatpush3.bf16.msra.mxu1 %v904_v35  ;;  %v906_v55 = vpack.c.bf16 %v878_v49, %v877_v48  ;;  %v1570_v35 = vld [vmem:[%s2111_s5 + $0x30] sm:$0xff]   ;;  %v945_v40 = vpop.permute.xlu1 %944 }
 0x1bf   : > { %v825_v57 = vadd.f32 %v824_v54, %v673_v25  ;;  %v1477_v58 = vpop.f32.mrb[10].mxu0  ;;  %v905_v59 = vpack.c.bf16 %v876_v51, %v875_v50 }
 0x1c0   : > { %v865_v60 = vmul.f32 0.2, %v833_v53  ;;  %v836_v61 = vadd.f32 %v1477_v58, %v688_v46  ;;  %v827_v62 = vpop.f32.mrb[11].mxu0  ;;  %v950_v41 = vpop.permute.xlu0 %949 }
 0x1c1   : > { %v863_v63 = vmul.f32 0.2, %v825_v57  ;;  %v828_v0 = vadd.f32 %v827_v62, %v678_v29  ;;  %1486 = vmatprep.subr.bf16.mxu1 %v905_v59 }
 0x1c2   : > { %v866_v1 = vmul.f32 0.2, %v836_v61  ;;  %1487 = vmatpush3.bf16.msra.mxu1 %v905_v59  ;;  %v881_v4 = vmax.f32 %v833_v53, %v865_v60  ;;  %v1203_v42 = vpop.permute.xlu1 %1202 }
 0x1c3   : > { %v864_v2 = vmul.f32 0.2, %v828_v0  ;;  %1488 = vmatprep.subr.bf16.mxu1 %v906_v55  ;;  %v879_v7 = vmax.f32 %v825_v57, %v863_v63 }
 0x1c4   : > { %v882_v5 = vmax.f32 %v836_v61, %v866_v1  ;;  %v1208_v43 = vpop.permute.xlu0 %1207 }
 0x1c5   : > { %v880_v8 = vmax.f32 %v828_v0, %v864_v2  ;;  %v1480_v9 = vpop.f32.mrb[12].mxu0 }
 0x1c6   : > { %v849_v10 = vadd.f32 %v1480_v9, %v703_v6  ;;  %v840_v11 = vpop.f32.mrb[13].mxu0  ;;  %1489 = vmatpush3.bf16.msra.mxu1 %v906_v55  ;;  %v908_v12 = vpack.c.bf16 %v882_v5, %v881_v4  ;;  %v955_v44 = vpop.permute.xlu1 %954 }
 0x1c7   : > { %v841_v14 = vadd.f32 %v840_v11, %v693_v56  ;;  %v1481_v15 = vpop.f32.mrb[14].mxu0  ;;  %v907_v16 = vpack.c.bf16 %v880_v8, %v879_v7 }
 0x1c8   : > { %v869_v17 = vmul.f32 0.2, %v849_v10  ;;  %v852_v18 = vadd.f32 %v1481_v15, %v708_v13  ;;  %v843_v19 = vpop.f32.mrb[15].mxu0  ;;  %v1213_v45 = vpop.permute.xlu0 %1212 }
 0x1c9   : > { %v867_v20 = vmul.f32 0.2, %v841_v14  ;;  %v844_v21 = vadd.f32 %v843_v19, %v698_v3  ;;  %1490 = vmatprep.subr.bf16.mxu1 %v907_v16 }
 0x1ca   : > { %v870_v22 = vmul.f32 0.2, %v852_v18  ;;  %1491 = vmatpush3.bf16.msra.mxu1 %v907_v16  ;;  %v885_v24 = vmax.f32 %v849_v10, %v869_v17  ;;  %v960_v46 = vpop.permute.xlu1 %959 }
 0x1cb   : > { %v868_v23 = vmul.f32 0.2, %v844_v21  ;;  %1492 = vmatprep.subr.bf16.mxu1 %v908_v12  ;;  %v883_v26 = vmax.f32 %v841_v14, %v867_v20 }
 0x1cc   : > { %v886_v25 = vmax.f32 %v852_v18, %v870_v22  ;;  %v1218_v47 = vpop.permute.xlu0 %1217 }
 0x1cd   : > { %v884_v27 = vmax.f32 %v844_v21, %v868_v23 }
 0x1ce   : > { %1493 = vmatpush3.bf16.msra.mxu1 %v908_v12  ;;  %v910_v28 = vpack.c.bf16 %v886_v25, %v885_v24  ;;  %v965_v48 = vpop.permute.xlu1 %964 }
 0x1cf   : > { %v909_v29 = vpack.c.bf16 %v884_v27, %v883_v26 }
 0x1d0   : > { %v1223_v49 = vpop.permute.xlu0 %1222 }
 0x1d1   : > { %1494 = vmatprep.subr.bf16.mxu1 %v909_v29 }
 0x1d2   : > { %1495 = vmatpush3.bf16.msra.mxu1 %v909_v29  ;;  %v970_v50 = vpop.permute.xlu1 %969 }
 0x1d3   : > { %1496 = vmatprep.subr.bf16.mxu1 %v910_v28 }
 0x1d4   : > { %v1228_v51 = vpop.permute.xlu0 %1227 }
 0x1d6   : > { %1497 = vmatpush3.bf16.msra.mxu1 %v910_v28  ;;  %v2050_v52 = vpop.permute.xlu1 %974 }
 0x1d8   : > { %v1233_v53 = vpop.permute.xlu0 %1232 }
 0x1d9   : > { %1499 = vmatmul.mubr.bf16.vlgmr.msra.gmra.mrb[0].mxu1 %v1565_v30 }
 0x1da   : > { %1502 = vmatprep.mubr.bf16.mxu1 %v1566_v31  ;;  %v980_v54 = vpop.permute.xlu1 %979 }
 0x1dc   : > { %v2052_v55 = vpop.permute.xlu0 %1237 }
 0x1de   : > { %v985_v57 = vpop.permute.xlu1 %984 }
 0x1e0   : > { %v1243_v2 = vpop.permute.xlu0 %1242 }
 0x1e1   : > { %1503 = vmatmul.mubr.bf16.gmra.mrb[4].mxu1 %v1567_v32 }
 0x1e2   : > { %1506 = vmatprep.mubr.bf16.mxu1 %v1568_v33  ;;  %v2054_v7 = vpop.permute.xlu1 %989 }
 0x1e4   : > { %v1248_v18 = vpop.permute.xlu0 %1247 }
 0x1e6   : > { %v995_v26 = vpop.permute.xlu1 %994 }
 0x1e9   : > { %1507 = vmatmul.mubr.bf16.gmra.mrb[8].mxu1 %v1569_v34 }
 0x1ea   : > { %1510 = vmatprep.mubr.bf16.mxu1 %v1570_v35 }
 0x1f1   : > { %1511 = vmatmul.mubr.bf16.gmra.mrb[12].mxu1 %v1571_v36 }
 0x2ac   : > { %v1500_v56 = vpop.f32.mrb[0].mxu1 }
 0x2ad   : > { %v1098_v58 = vadd.f32 %v1500_v56, %v940_v39  ;;  %v1089_v59 = vpop.f32.mrb[1].mxu1 }
 0x2ae   : > { %v1090_v60 = vadd.f32 %v1089_v59, %v930_v37  ;;  %v1501_v61 = vpop.f32.mrb[2].mxu1  ;;  %v1253_v37 = vpop.permute.xlu0 %1252 }
 0x2af   : > { %v1154_v62 = vmul.f32 0.2, %v1098_v58  ;;  %v1101_v3 = vadd.f32 %v1501_v61, %v945_v40  ;;  %v1092_v63 = vpop.f32.mrb[3].mxu1 }
 0x2b0   : > { %v1152_v0 = vmul.f32 0.2, %v1090_v60  ;;  %v1093_v1 = vadd.f32 %v1092_v63, %v935_v38 }
 0x2b1   : > { %v1155_v4 = vmul.f32 0.2, %v1101_v3  ;;  %v1170_v8 = vmax.f32 %v1098_v58, %v1154_v62 }
 0x2b2   : > { %v1168_v5 = vmax.f32 %v1090_v60, %v1152_v0  ;;  %v1153_v6 = vmul.f32 0.2, %v1093_v1  ;;  %v1258_v63 = vpop.permute.xlu0 %1257 }
 0x2b3   : > { %v1171_v11 = vmax.f32 %v1101_v3, %v1155_v4  ;;  %v1282_v19 = vmul.f32 %v1213_v45, %v1170_v8 }
 0x2b4   : > { %v1169_v9 = vmax.f32 %v1093_v1, %v1153_v6  ;;  %v1504_v10 = vpop.f32.mrb[4].mxu1  ;;  %v1280_v14 = vmul.f32 %v1203_v42, %v1168_v5 }
 0x2b5   : > { %v1114_v12 = vadd.f32 %v1504_v10, %v960_v46  ;;  %v1105_v13 = vpop.f32.mrb[5].mxu1  ;;  %v1283_v27 = vmul.f32 %v1218_v47, %v1171_v11 }
 0x2b6   : > { %v1281_v15 = vmul.f32 %v1208_v43, %v1169_v9  ;;  %v1106_v16 = vadd.f32 %v1105_v13, %v950_v41  ;;  %v1505_v17 = vpop.f32.mrb[6].mxu1 }
 0x2b7   : > { %v1117_v20 = vadd.f32 %v1505_v17, %v965_v48  ;;  %v1108_v21 = vpop.f32.mrb[7].mxu1  ;;  %v1158_v23 = vmul.f32 0.2, %v1114_v12 }
 0x2b8   : > { %v1296_v22 = vadd.f32 %v1281_v15, %v1280_v14  ;;  %v1156_v24 = vmul.f32 0.2, %v1106_v16  ;;  %v1109_v25 = vadd.f32 %v1108_v21, %v955_v44  ;;  %v1000_v44 = vpop.permute.xlu1 %999 }
 0x2b9   : > { %v1159_v30 = vmul.f32 0.2, %v1117_v20  ;;  %v1174_v32 = vmax.f32 %v1114_v12, %v1158_v23 }
 0x2ba   : > { %v1297_v28 = vadd.f32 %v1296_v22, %v1282_v19  ;;  %v1172_v29 = vmax.f32 %v1106_v16, %v1156_v24  ;;  %v1157_v31 = vmul.f32 0.2, %v1109_v25 }
 0x2bb   : > { %v1175_v41 = vmax.f32 %v1117_v20, %v1159_v30  ;;  %v1286_v56 = vmul.f32 %v1233_v53, %v1174_v32 }
 0x2bc   : > { %v1284_v33 = vmul.f32 %v1223_v49, %v1172_v29  ;;  %v1298_v34 = vadd.f32 %v1297_v28, %v1283_v27  ;;  %v1173_v35 = vmax.f32 %v1109_v25, %v1157_v31  ;;  %v1508_v36 = vpop.f32.mrb[8].mxu1  ;;  %v1005_v5 = vpop.permute.xlu1 %1004 }
 0x2bd   : > { %v1130_v38 = vadd.f32 %v1508_v36, %v980_v54  ;;  %v1121_v39 = vpop.f32.mrb[9].mxu1  ;;  %v1287_v61 = vmul.f32 %v2052_v55, %v1175_v41 }
 0x2be   : > { %v1299_v40 = vadd.f32 %v1298_v34, %v1284_v33  ;;  %v1285_v42 = vmul.f32 %v1228_v51, %v1173_v35  ;;  %v1122_v43 = vadd.f32 %v1121_v39, %v970_v50  ;;  %v1509_v45 = vpop.f32.mrb[10].mxu1  ;;  %v1323_v35 = vlaneseq }
 0x2bf   : > { %v1162_v46 = vmul.f32 0.2, %v1130_v38  ;;  %v1133_v47 = vadd.f32 %v1509_v45, %v985_v57  ;;  %v1124_v48 = vpop.f32.mrb[11].mxu1 }
 0x2c0   : > { %v1300_v58 = vadd.f32 %v1299_v40, %v1285_v42  ;;  %v1160_v59 = vmul.f32 0.2, %v1122_v43  ;;  %v1125_v49 = vadd.f32 %v1124_v48, %v2050_v52  ;;  %v1268_v23 = vpop.permute.xlu1 %1267 }
 0x2c1   : > { %v1163_v60 = vmul.f32 0.2, %v1133_v47  ;;  %v1178_v0 = vmax.f32 %v1130_v38, %v1162_v46  ;;  %v1324_v38 = vshrl.u32 %v1323_v35, 7 }
 0x2c2   : > { %v1301_v62 = vadd.f32 %v1300_v58, %v1286_v56  ;;  %v1176_v54 = vmax.f32 %v1122_v43, %v1160_v59  ;;  %v1161_v3 = vmul.f32 0.2, %v1125_v49 }
 0x2c3   : > { %v1179_v57 = vmax.f32 %v1133_v47, %v1163_v60  ;;  %v1290_v11 = vmul.f32 %v1253_v37, %v1178_v0  ;;  %v1325_v41 = vsub.s32 0, %v1324_v38 }
 0x2c4   : > { %v1288_v51 = vmul.f32 %v1243_v2, %v1176_v54  ;;  %v1302_v50 = vadd.f32 %v1301_v62, %v1287_v61  ;;  %v1177_v1 = vmax.f32 %v1125_v49, %v1161_v3  ;;  %v1512_v4 = vpop.f32.mrb[12].mxu1  ;;  %v1263_v2 = vpop.permute.xlu0 %1262 }
 0x2c5   : > { %v1146_v6 = vadd.f32 %v1512_v4, %v1000_v44  ;;  %v1137_v53 = vpop.f32.mrb[13].mxu1  ;;  %v1291_v17 = vmul.f32 %v1258_v63, %v1179_v57 }
 0x2c6   : > { %v1303_v8 = vadd.f32 %v1302_v50, %v1288_v51  ;;  %v1289_v9 = vmul.f32 %v1248_v18, %v1177_v1  ;;  %v1138_v52 = vadd.f32 %v1137_v53, %v2054_v7  ;;  %v1513_v10 = vpop.f32.mrb[14].mxu1 }
 0x2c7   : > { %v1149_v55 = vadd.f32 %v1513_v10, %v1005_v5  ;;  %v1140_v12 = vpop.f32.mrb[15].mxu1  ;;  %v1166_v14 = vmul.f32 0.2, %v1146_v6 }
 0x2c8   : > { %v1304_v13 = vadd.f32 %v1303_v8, %v1289_v9  ;;  %v1164_v15 = vmul.f32 0.2, %v1138_v52  ;;  %v1141_v16 = vadd.f32 %v1140_v12, %v995_v26  ;;  %v1273_v30 = vpop.permute.xlu0 %1272  ;;  %v1278_v26 = vpop.permute.xlu1 %1277 }
 0x2c9   : > { %v1167_v21 = vmul.f32 0.2, %v1149_v55  ;;  %v1182_v24 = vmax.f32 %v1146_v6, %v1166_v14 }
 0x2ca   : > { %v1305_v19 = vadd.f32 %v1304_v13, %v1290_v11  ;;  %v1180_v20 = vmax.f32 %v1138_v52, %v1164_v15  ;;  %v1165_v22 = vmul.f32 0.2, %v1141_v16 }
 0x2cb   : > { %v1183_v28 = vmax.f32 %v1149_v55, %v1167_v21  ;;  %v1294_v31 = vmul.f32 %v1273_v30, %v1182_v24 }
 0x2cc   : > { %v1292_v25 = vmul.f32 %v1263_v2, %v1180_v20  ;;  %v1306_v18 = vadd.f32 %v1305_v19, %v1291_v17  ;;  %v1181_v7 = vmax.f32 %v1141_v16, %v1165_v22  ;;  %v1321_v43 = vpop.permute.xlu0 %1320 }
 0x2cd   : > { %v1295_v33 = vmul.f32 %v1278_v26, %v1183_v28  ;;  %v1326_v44 = vrot.slane %v1321_v43, %v1325_v41 }
 0x2ce   : > { %v1307_v27 = vadd.f32 %v1306_v18, %v1292_v25  ;;  %v1293_v29 = vmul.f32 %v1268_v23, %v1181_v7 }
 0x2d0   : > { %v1308_v32 = vadd.f32 %v1307_v27, %v1293_v29 }
 0x2d2   : > { %v1309_v34 = vadd.f32 %v1308_v32, %v1294_v31 }
 0x2d4   : > { %v1310_v36 = vadd.f32 %v1309_v34, %v1295_v33 }
 0x2d6   : > { %v1311_v37 = vrot.slane %v1310_v36, 4 }
 0x2d8   : > { %v1312_v39 = vadd.f32 %v1311_v37, %v1310_v36 }
 0x2da   : > { %v1313_v40 = vrot.slane %v1312_v39, 2 }
 0x2dc   : > { %v1314_v42 = vadd.f32 %v1313_v40, %v1312_v39 }
 0x2de   : > { %v1315_v45 = vrot.slane %v1314_v42, 1 }
 0x2e0   : > { %v1316_v46 = vadd.f32 %v1315_v45, %v1314_v42 }
 0x2e2   : > { %v1327_v47 = vadd.f32 %v1326_v44, %v1316_v46 }
 0x2e4   : > { %1328 = vst [vmem:[%s322_s25] sm:$0x1] %v1327_v47 }
 0x2e5   : > { %1585 = shalt.err (!%p1582_p3)
}
 0x2e6   : > { %s1586_s18 = scalar_lea.hbm %s2064_s29, 16  ;;  %s1590_s24 = scalar_lea.hbm %s2115_s9, 32 }
 0x2e7   : > { %p1587_p4 = scmp.ne.s32.totalorder %s2064_s29, %s1586_s18  ;;  %p1591_p9 = scmp.lt.u32.totalorder %s2064_s29, %s2115_s9 }
 0x2e8   : > { %p1592_p10 = scmp.lt.u32.totalorder %s1590_s24, %s1586_s18  ;;  %p1594_p12 = scmp.lt.u32.totalorder %s1586_s18, %s2064_s29 }
 0x2e9   : > { %p1588_p7 = pnand %p1587_p4, %p1729_p5 }
 0x2ea   : > { %p1593_p11 = por %p1592_p10, %p1591_p9 }
 0x2eb   : > { %p1589_p8 = pneg %p1588_p7 }
 0x2ec   : > { %p1595_p13 = por %p1594_p12, %p1593_p11 }
 0x2ee   : > { %p1596_p0 = pnand %p1595_p13, %p1589_p8 }
 0x2f0   : > { %1599 = shalt.err (!%p1596_p0)
}
 0x2f1   : > { %1514 = dma.vmem_to_hbm [thread:$0]  (%p1729_p5), %s2066_s26, 16, %s2064_s29, %s1330_s30  }
 0x2f2 PF: > { %p1520_p1 = scmp.ge.s32.totalorder %s1634_s14, 2  ;;  %s1354_s28 = sand.u32 1, %s1622_s11  }
 0x2f3   : > { %s1355_s10 = scalar_lea.sflag [#allocation4], %s1354_s28 }
 0x2f4   : > { %p1517_p2 = pnand %p1520_p1, %p1733_p6 }
 0x2f6   : > { %1617 = dma.done.wait (!%p1517_p2), %s1355_s10, 16  }
 0x2f7   : > { %1619 = vsyncadd (!%p1517_p2), %s1355_s10, 4294967280  ;;  %p21_p3 = scmp.ge.s32.totalorder %s1716_s16, 4   ;;  %s2118_s11 = smov %s1626_s12 }
 0x2f8   : > { %s2119_s12 = smov %s1630_s13  ;;  %s2120_s13 = smov %s1727_s19 }
 0x2f9   : > { %s2121_s14 = smov %s1716_s16  ;;  %23 = sbr.rel (!%p21_p3) target bundleno = 6 (0x6), region = 91 }
 0x300   :  { %1359 = vsyncpa [#allocation4], 1 }
 0x301   :  { %1361 = vsyncpa [#allocation4 + $0x1], 1 }

</bundles_post_ra>
